<compile_context>
chip_gen: v7x
topology: tpu7x:2x2x1
jax: 0.10.0
libtpu: 0.0.40
codegen_flags: <defaults>
</compile_context>

<pallas_src>
import functools
import math

import jax
import jax.numpy as jnp
from jax.experimental import pallas as pl
from jax.experimental.pallas import tpu as pltpu


# ---------------------------------------------------------------------------
# Kernel bodies
# ---------------------------------------------------------------------------
def _concat_kernel_aligned(*refs, offsets, sizes):
    """All offsets/sizes are 128-multiples -> unmasked full-width stores."""
    out_ref = refs[-1]
    in_refs = refs[:-1]
    for x_ref, off, size in zip(in_refs, offsets, sizes):
        out_ref[:, off:off + size] = x_ref[...]


def _concat_kernel_fused(*refs):
    """Unaligned lane sizes -> build the tile in-register, one lane-dense store."""
    out_ref = refs[-1]
    in_refs = refs[:-1]
    out_ref[...] = jnp.concatenate([r[...] for r in in_refs], axis=-1)


# ---------------------------------------------------------------------------
# Generation-aware VMEM sizing
# ---------------------------------------------------------------------------
def _vmem_budgets():
    """(working-set budget, scoped vmem limit) in bytes, per TPU generation."""
    try:
        cap = int(pltpu.get_tpu_info().vmem_capacity_bytes)
    except Exception:
        cap = 0  # unknown -> conservative (v7x-safe) defaults
    if cap >= 96 * 1024 * 1024:            # v5e / v6e: 128 MiB physical VMEM
        return 64 * 1024 * 1024, 100 * 1024 * 1024
    return 32 * 1024 * 1024, 48 * 1024 * 1024   # v7x: 64 MiB per TensorCore


# ---------------------------------------------------------------------------
# Last-dim concat (core pallas_call)
# ---------------------------------------------------------------------------
def concatenate_last_dim(*tensors):
    """Pallas implementation of jnp.concatenate(tensors, axis=-1)."""
    assert len(tensors) >= 1
    lead = tensors[0].shape[:-1]
    dtype = tensors[0].dtype
    for t in tensors:
        if t.shape[:-1] != lead:
            raise ValueError(f"non-concat dims must match: {t.shape} vs {lead}")
        if t.dtype != dtype:
            raise ValueError("all inputs must share a dtype")

    sizes = tuple(int(t.shape[-1]) for t in tensors)
    offsets = tuple(int(sum(sizes[:i])) for i in range(len(sizes)))
    d_out = int(sum(sizes))

    # Flatten all leading dims into a single row axis (free, row-major).
    n_rows = int(math.prod(lead)) if lead else 1
    flat_inputs = [t.reshape(n_rows, d) for t, d in zip(tensors, sizes)]

    itemsize = jnp.dtype(dtype).itemsize
    vmem_budget, vmem_limit = _vmem_budgets()

    # Working set ~ double-buffered inputs + output:
    #   2 * (sum(Di) + d_out) * tr * itemsize = 4 * d_out * tr * itemsize.
    tr = vmem_budget // max(1, 4 * d_out * itemsize)
    tr = max(1, int(tr))

    # Sublane alignment (f32 -> 8, bf16 -> 16, int8/fp8 -> 32).
    sublane = max(8, 32 // itemsize)

    if tr >= n_rows or n_rows <= sublane:
        # Full-extent row block is always a legal tile (and covers the
        # "tr smaller than sublane" edge case for extremely wide outputs).
        tr = n_rows
    else:
        tr = max(sublane, (tr // sublane) * sublane)
        # Keep >= ~4 grid steps when the row count permits, so v7x can shard
        # the parallel axis across its 2 TensorCores and the double-buffer
        # pipeline has something to overlap on all generations.
        quarter = (pl.cdiv(n_rows, 4) // sublane) * sublane
        if quarter >= sublane:
            tr = min(tr, quarter)
        tr = min(tr, n_rows)

    grid = (pl.cdiv(n_rows, tr),)

    lane_aligned = all(o % 128 == 0 for o in offsets) and all(
        s % 128 == 0 for s in sizes)
    if lane_aligned:
        kernel = functools.partial(
            _concat_kernel_aligned, offsets=offsets, sizes=sizes)
    else:
        kernel = _concat_kernel_fused

    in_specs = [pl.BlockSpec((tr, d), lambda r: (r, 0)) for d in sizes]
    out_spec = pl.BlockSpec((tr, d_out), lambda r: (r, 0))

    total_bytes = sum(int(t.size) * itemsize for t in tensors)

    out_flat = pl.pallas_call(
        kernel,
        out_shape=jax.ShapeDtypeStruct((n_rows, d_out), dtype),
        grid_spec=pltpu.PrefetchScalarGridSpec(
            num_scalar_prefetch=0,
            grid=grid,
            in_specs=in_specs,
            out_specs=out_spec,
        ),
        compiler_params=pltpu.CompilerParams(
            dimension_semantics=("parallel",),
            vmem_limit_bytes=vmem_limit,
        ),
        cost_estimate=pl.CostEstimate(
            flops=0, transcendentals=0, bytes_accessed=2 * total_bytes
        ),
    )(*flat_inputs)

    return out_flat.reshape(lead + (d_out,))


# ---------------------------------------------------------------------------
# Full `Concatenate.forward` semantics: concat along an arbitrary dim.
# ---------------------------------------------------------------------------
def concatenate(*tensors, dim=-1):
    assert len(tensors) >= 1
    ndim = tensors[0].ndim
    axis = dim % ndim

    lead = tensors[0].shape[:axis]
    trail = tensors[0].shape[axis + 1:]
    dtype = tensors[0].dtype
    for t in tensors:
        if t.ndim != ndim or t.shape[:axis] != lead or t.shape[axis + 1:] != trail:
            raise ValueError(
                f"non-concat dims must match: got {t.shape}, expected "
                f"{lead} + (*,) + {trail}")
        if t.dtype != dtype:
            raise ValueError("all inputs must share a dtype")

    if axis == ndim - 1:
        return concatenate_last_dim(*tensors)

    # Pure-reshape path: dims after `axis` match, so concat along `axis` is a
    # last-dim concat of (rows, axis_i * trail) row-major views. No transposes.
    trail_prod = int(math.prod(trail)) if trail else 1
    rows = int(math.prod(lead)) if lead else 1
    flat = [t.reshape(rows, int(t.shape[axis]) * trail_prod) for t in tensors]
    out2d = concatenate_last_dim(*flat)
    total_axis = int(sum(t.shape[axis] for t in tensors))
    return out2d.reshape(lead + (total_axis,) + trail)


# ---------------------------------------------------------------------------
# Smoke tests
# ---------------------------------------------------------------------------
if __name__ == "__main__":
    key = jax.random.PRNGKey(0)
    k1, k2, k3, k4, k5, k6 = jax.random.split(key, 6)

    B, S = 2, 8

    # 1) Lane-aligned feature sizes (128-multiples) -> unmasked vst fast path.
    a1 = jax.random.normal(k1, (B, S, 128), dtype=jnp.float32)
    a2 = jax.random.normal(k2, (B, S, 256), dtype=jnp.float32)
    a3 = jax.random.normal(k3, (B, S, 128), dtype=jnp.float32)
    out_a = jax.block_until_ready(concatenate(a1, a2, a3))
    ref_a = jnp.concatenate([a1, a2, a3], axis=-1)
    assert out_a.shape == ref_a.shape, (out_a.shape, ref_a.shape)
    assert jnp.allclose(out_a, ref_a), "mismatch (aligned last-dim concat)"

    # 2) Unaligned feature sizes -> fused in-register concat + one dense store.
    b1 = jax.random.normal(k4, (B, S, 32), dtype=jnp.float32)
    b2 = jax.random.normal(k5, (B, S, 64), dtype=jnp.float32)
    b3 = jax.random.normal(k6, (B, S, 32), dtype=jnp.float32)
    out_b = jax.block_until_ready(concatenate(b1, b2, b3))
    ref_b = jnp.concatenate([b1, b2, b3], axis=-1)
    assert out_b.shape == ref_b.shape, (out_b.shape, ref_b.shape)
    assert jnp.allclose(out_b, ref_b), "mismatch (unaligned last-dim concat)"

    # 3) Concat along a non-last dim (valid inputs: matching non-concat dims).
    out_c = jax.block_until_ready(concatenate(a1, a3, dim=1))
    ref_c = jnp.concatenate([a1, a3], axis=1)
    assert out_c.shape == ref_c.shape, (out_c.shape, ref_c.shape)
    assert jnp.allclose(out_c, ref_c), "mismatch (dim=1 concat)"

    # 4) Concat along dim=0.
    out_d = jax.block_until_ready(concatenate(b1, b1, dim=0))
    ref_d = jnp.concatenate([b1, b1], axis=0)
    assert out_d.shape == ref_d.shape, (out_d.shape, ref_d.shape)
    assert jnp.allclose(out_d, ref_d), "mismatch (dim=0 concat)"

    # 5) Invalid concat (mismatched non-concat dims) must raise, like torch.cat.
    try:
        concatenate(b1, b2, dim=1)
        raise AssertionError("expected ValueError for mismatched non-concat dims")
    except ValueError:
        pass

    print("KERNEL_OK")
</pallas_src>

<mosaic_0001>
module attributes {stable_mosaic.version = 11 : i64} {
  func.func @_concat_kernel_aligned(%arg0: i32, %arg1: memref<16x128xf32, #tpu.memory_space<vmem>>, %arg2: memref<16x256xf32, #tpu.memory_space<vmem>>, %arg3: memref<16x128xf32, #tpu.memory_space<vmem>>, %arg4: memref<16x512xf32, #tpu.memory_space<vmem>>) attributes {dimension_semantics = [#tpu.dimension_semantics<parallel>], iteration_bounds = array<i64: 1>, scalar_prefetch = 0 : i64, scratch_operands = 0 : i64, tpu.core_type = #tpu.core_type<tc>, window_params = [{transform_indices = @transform_0, window_bounds = array<i64: 16, 128>}, {transform_indices = @transform_1, window_bounds = array<i64: 16, 256>}, {transform_indices = @transform_2, window_bounds = array<i64: 16, 128>}, {transform_indices = @transform_3, window_bounds = array<i64: 16, 512>}]} {
    %c0 = arith.constant 0 : index
    %c0_0 = arith.constant 0 : index
    %0 = vector.load %arg1[%c0, %c0_0] : memref<16x128xf32, #tpu.memory_space<vmem>>, vector<16x128xf32>
    %c0_1 = arith.constant 0 : index
    %c0_2 = arith.constant 0 : index
    %1 = vector.load %arg4[%c0_1, %c0_2] : memref<16x512xf32, #tpu.memory_space<vmem>>, vector<16x128xf32>
    tpu.vector_store %arg4[%c0_1, %c0_2], %0 {strides = array<i32>} : memref<16x512xf32, #tpu.memory_space<vmem>>, vector<16x128xf32>,
    %c0_3 = arith.constant 0 : index
    %c0_4 = arith.constant 0 : index
    %2 = vector.load %arg2[%c0_3, %c0_4] : memref<16x256xf32, #tpu.memory_space<vmem>>, vector<16x256xf32>
    %c0_5 = arith.constant 0 : index
    %c128 = arith.constant 128 : index
    %3 = vector.load %arg4[%c0_5, %c128] : memref<16x512xf32, #tpu.memory_space<vmem>>, vector<16x256xf32>
    tpu.vector_store %arg4[%c0_5, %c128], %2 {strides = array<i32>} : memref<16x512xf32, #tpu.memory_space<vmem>>, vector<16x256xf32>,
    %c0_6 = arith.constant 0 : index
    %c0_7 = arith.constant 0 : index
    %4 = vector.load %arg3[%c0_6, %c0_7] : memref<16x128xf32, #tpu.memory_space<vmem>>, vector<16x128xf32>
    %c0_8 = arith.constant 0 : index
    %c384 = arith.constant 384 : index
    %5 = vector.load %arg4[%c0_8, %c384] : memref<16x512xf32, #tpu.memory_space<vmem>>, vector<16x128xf32>
    tpu.vector_store %arg4[%c0_8, %c384], %4 {strides = array<i32>} : memref<16x512xf32, #tpu.memory_space<vmem>>, vector<16x128xf32>,
    return
  }
  func.func @transform_0(%arg0: i32) -> (i32, i32) {
    %c0_i32 = arith.constant 0 : i32
    %c0_i32_0 = arith.constant 0 : i32
    return %arg0, %c0_i32 : i32, i32
  }
  func.func @transform_1(%arg0: i32) -> (i32, i32) {
    %c0_i32 = arith.constant 0 : i32
    %c0_i32_0 = arith.constant 0 : i32
    return %arg0, %c0_i32 : i32, i32
  }
  func.func @transform_2(%arg0: i32) -> (i32, i32) {
    %c0_i32 = arith.constant 0 : i32
    %c0_i32_0 = arith.constant 0 : i32
    return %arg0, %c0_i32 : i32, i32
  }
  func.func @transform_3(%arg0: i32) -> (i32, i32) {
    %c0_i32 = arith.constant 0 : i32
    %c0_i32_0 = arith.constant 0 : i32
    return %arg0, %c0_i32 : i32, i32
  }
}

</mosaic_0001>

<bundles_post_ra>
// kernel: tpu_custom_call.1
= control target key start
LH: loop header
LB: loop body
LE: loop exit
PB: predicated region body
PF: predicated region fallthrough
CT: control target
= control target key end

     0   :  { %8 = vsyncpa [#allocation3], 0  ;;  %s272_s0 = inlined_call_operand.hbm [shape: f32[16,128], index: 0, kind: input, shape index: {}]   ;;  %s273_s1 = inlined_call_operand.hbm [shape: f32[16,256], index: 1, kind: input, shape index: {}]   ;;  %s274_s2 = inlined_call_operand.hbm [shape: f32[16,128], index: 2, kind: input, shape index: {}]   ;;  %s275_s3 = inlined_call_operand.hbm [shape: f32[16,512], index: 3, kind: output, shape index: {}]  }
   0x1   :  { %9 = vsyncpa [#allocation6], 0 }
   0x2   :  { %10 = vsyncpa [#allocation4], 0  ;;  %s194_s12 = smov [#allocation5]   ;;  %s100_s16 = scalar_lea.hbm %s273_s1, 512 }
   0x3   :  { %s28_s13 = sshll.u32 %s194_s12, 4  ;;  %p101_p0 = scmp.ne.s32.totalorder %s273_s1, %s100_s16  ;;  %s29_s13 = int_to_ptr.vmem [resolvable:$true] %s28_s13 }
   0x4   :  { %p104_p1 = scmp.lt.u32.totalorder %s100_s16, %s273_s1 }
   0x6   :  { %p106_p2 = pnand %p104_p1, %p101_p0 }
   0x8   :  { %109 = shalt.err (!%p106_p2)
}
   0x9   :  { %s110_s21 = scalar_lea.vmem %s29_s13, 512  ;;  %p115_p4 = scmp.lt.s32.totalorder %s29_s13, %s29_s13 }
   0xa   :  { %p111_p3 = scmp.ne.s32.totalorder %s29_s13, %s110_s21  ;;  %p116_p5 = scmp.lt.s32.totalorder %s110_s21, %s110_s21 }
   0xc   :  { %p117_p6 = por %p116_p5, %p115_p4 }
   0xe   :  { %p118_p7 = pnand %p117_p6, %p111_p3 }
  0x10   :  { %121 = shalt.err (!%p118_p7)
}
  0x11   :  { %s195_s22 = smov 256   ;;  %s196_s23 = smov 16  }
  0x12   :  { %34 = dma.hbm_to_vmem [thread:$0]  %s273_s1, 512, %s29_s13, [#allocation6], %s195_s22, %s195_s22, %s196_s23  }
  0x13   :  { %s197_s26 = smov [#allocation2]   ;;  %s122_s30 = scalar_lea.hbm %s272_s0, 256 }
  0x14   :  { %s16_s27 = sshll.u32 %s197_s26, 4  ;;  %p123_p8 = scmp.ne.s32.totalorder %s272_s0, %s122_s30  ;;  %s17_s27 = int_to_ptr.vmem [resolvable:$true] %s16_s27 }
  0x15   :  { %p126_p9 = scmp.lt.u32.totalorder %s122_s30, %s272_s0 }
  0x17   :  { %p128_p10 = pnand %p126_p9, %p123_p8 }
  0x19   :  { %131 = shalt.err (!%p128_p10)
}
  0x1a   :  { %s132_s8 = scalar_lea.vmem %s17_s27, 256  ;;  %p137_p12 = scmp.lt.s32.totalorder %s17_s27, %s17_s27 }
  0x1b   :  { %p133_p11 = scmp.ne.s32.totalorder %s17_s27, %s132_s8  ;;  %p138_p13 = scmp.lt.s32.totalorder %s132_s8, %s132_s8 }
  0x1d   :  { %p139_p0 = por %p138_p13, %p137_p12 }
  0x1f   :  { %p140_p1 = pnand %p139_p0, %p133_p11 }
  0x21   :  { %143 = shalt.err (!%p140_p1)
}
  0x22   :  { %s198_s1 = smov 128   ;;  %s199_s9 = smov 8  }
  0x23   :  { %22 = dma.hbm_to_vmem [thread:$0]  %s272_s0, 256, %s17_s27, [#allocation3], %s198_s1, %s198_s1, %s199_s9  }
  0x24   :  { %s200_s12 = smov [#allocation7]   ;;  %s144_s16 = scalar_lea.hbm %s274_s2, 256 }
  0x25   :  { %s40_s13 = sshll.u32 %s200_s12, 4  ;;  %p145_p2 = scmp.ne.s32.totalorder %s274_s2, %s144_s16  ;;  %s41_s13 = int_to_ptr.vmem [resolvable:$true] %s40_s13 }
  0x26   :  { %p148_p3 = scmp.lt.u32.totalorder %s144_s16, %s274_s2 }
  0x28   :  { %p150_p4 = pnand %p148_p3, %p145_p2 }
  0x2a   :  { %153 = shalt.err (!%p150_p4)
}
  0x2b   :  { %s154_s21 = scalar_lea.vmem %s41_s13, 256  ;;  %p159_p6 = scmp.lt.s32.totalorder %s41_s13, %s41_s13 }
  0x2c   :  { %p155_p5 = scmp.ne.s32.totalorder %s41_s13, %s154_s21  ;;  %p160_p7 = scmp.lt.s32.totalorder %s154_s21, %s154_s21 }
  0x2e   :  { %p161_p8 = por %p160_p7, %p159_p6 }
  0x30   :  { %p162_p9 = pnand %p161_p8, %p155_p5 }
  0x32   :  { %165 = shalt.err (!%p162_p9)
}
  0x33   :  { %46 = dma.hbm_to_vmem [thread:$0]  %s274_s2, 256, %s41_s13, [#allocation6], %s198_s1, %s198_s1, %s199_s9  }
  0x34   :  { %188 = dma.done.wait [#allocation3], 256  }
  0x35   :  { %189 = vsyncadd [#allocation3], 4294967040 }
  0x36   :  { %190 = dma.done.wait [#allocation6], 768  }
  0x37   :  { %191 = vsyncadd [#allocation6], 4294966528  ;;  %s201_s23 = smov [#allocation8]   ;;  %v56_v0 = vld [vmem:[#allocation2] sm:$0xff]  ;;  %v57_v1 = vld [vmem:[#allocation2 + $0x8] sm:$0xff] }
  0x38   :  { %s77_s24 = sshll.u32 %s201_s23, 4  ;;  %v60_v2 = vld [vmem:[#allocation5] sm:$0xff]  ;;  %58 = vst [vmem:[#allocation8] sm:$0xff] %v56_v0  ;;  %59 = vst [vmem:[#allocation8 + $0x20] sm:$0xff] %v57_v1  ;;  %v61_v3 = vld [vmem:[#allocation5 + $0x8] sm:$0xff]  ;;  %s78_s24 = int_to_ptr.vmem [resolvable:$true] %s77_s24 }
  0x39   :  { %64 = vst [vmem:[#allocation8 + $0x8] sm:$0xff] %v60_v2  ;;  %v62_v4 = vld [vmem:[#allocation5 + $0x10] sm:$0xff]  ;;  %v63_v5 = vld [vmem:[#allocation5 + $0x18] sm:$0xff]  ;;  %65 = vst [vmem:[#allocation8 + $0x10] sm:$0xff] %v61_v3  ;;  %s166_s2 = scalar_lea.vmem %s78_s24, 1024  ;;  %p171_p11 = scmp.lt.s32.totalorder %s78_s24, %s78_s24 }
  0x3a   :  { %66 = vst [vmem:[#allocation8 + $0x28] sm:$0xff] %v62_v4  ;;  %67 = vst [vmem:[#allocation8 + $0x30] sm:$0xff] %v63_v5  ;;  %v68_v6 = vld [vmem:[#allocation7] sm:$0xff]  ;;  %v69_v7 = vld [vmem:[#allocation7 + $0x8] sm:$0xff]  ;;  %p167_p10 = scmp.ne.s32.totalorder %s78_s24, %s166_s2  ;;  %p172_p12 = scmp.lt.s32.totalorder %s166_s2, %s166_s2 }
  0x3b   :  { %70 = vst [vmem:[#allocation8 + $0x18] sm:$0xff] %v68_v6  ;;  %71 = vst [vmem:[#allocation8 + $0x38] sm:$0xff] %v69_v7 }
  0x3c   :  { %p173_p13 = por %p172_p12, %p171_p11 }
  0x3e   :  { %p174_p0 = pnand %p173_p13, %p167_p10 }
  0x40   :  { %177 = shalt.err (!%p174_p0)
}
  0x41   :  { %s178_s27 = scalar_lea.hbm %s275_s3, 1024 }
  0x42   :  { %p179_p1 = scmp.ne.s32.totalorder %s275_s3, %s178_s27  ;;  %p182_p2 = scmp.lt.u32.totalorder %s178_s27, %s275_s3 }
  0x44   :  { %p184_p3 = pnand %p182_p2, %p179_p1 }
  0x46   :  { %187 = shalt.err (!%p184_p3)
}
  0x47   :  { %s202_s5 = smov 512   ;;  %s203_s6 = smov 32  }
  0x48   :  { %83 = dma.vmem_to_hbm [thread:$0]  %s78_s24, 1024, %s275_s3, [#allocation4], %s202_s5, %s202_s5, %s203_s6  }
  0x49   :  { %192 = dma.done.wait [#allocation4], 1024  }
  0x4a   :  { %193 = vsyncadd [#allocation4], 4294966272 }
  0x4b   :  { %87 = vsyncpa [#allocation3], 1 }
  0x4c   :  { %88 = vsyncpa [#allocation6], 1 }
  0x4d   :  { %89 = vsyncpa [#allocation4], 1 }

</bundles_post_ra>
